<compile_context>
chip_gen: v5e
topology: v5e:2x2
jax: 0.10.0
libtpu: 0.0.40
codegen_flags: <defaults>
</compile_context>

<pallas_src>
import jax
import jax.numpy as jnp
from jax.experimental import pallas as pl
from jax.experimental.pallas import tpu as pltpu

_LANE_CANDIDATES = (8192, 4096, 2048, 1024, 512, 256, 128)
_TARGET_BLOCK_BYTES = 4 * 1024 * 1024   # ~4 MiB per block buffer
_VMEM_LIMIT_BYTES = 32 * 1024 * 1024    # safe on v5e/v6e (128 MiB) and v7x (64 MiB)


def _round_up(a: int, m: int) -> int:
    return ((a + m - 1) // m) * m


def _sublane_multiple(dtype) -> int:
    # Sub-32-bit dtypes pack along sublanes: f32 -> 8, bf16/f16 -> 16, i8/fp8 -> 32.
    itemsize = jnp.dtype(dtype).itemsize
    return max(8, 32 // max(itemsize, 1))


def _pick_lane_w(total: int):
    """Largest lane width (multiple of 128) dividing `total`; pad only as a last resort."""
    for lw in _LANE_CANDIDATES:
        if total % lw == 0:
            return lw, total
    # Ragged total (not a multiple of 128): minimal pad up to a multiple of 128.
    padded = _round_up(total, 128)
    for lw in _LANE_CANDIDATES:
        if padded % lw == 0:
            return lw, padded
    return 128, padded


def _pick_tile_r(rows: int, lane_w: int, itemsize: int, sub: int) -> int:
    # Cap per-buffer block at ~4 MiB (in+out double-buffered ≈ 16 MiB VMEM).
    max_r = max(sub, (_TARGET_BLOCK_BYTES // (lane_w * itemsize)) // sub * sub)
    # Aim for >= ~4 grid steps so DMA-in / compute / DMA-out overlap and the
    # grid can shard across TensorCores (v7x megacore).
    want_r = _round_up(pl.cdiv(rows, 4), sub)
    tile_r = min(max_r, want_r)
    if tile_r >= rows:
        return rows          # single block == full array dims (always legal)
    return tile_r            # multiple of `sub`; Pallas masks the ragged last block


def _h_sigmoid_kernel(x_ref, o_ref):
    x = x_ref[...]
    # ReLU6(x + 3) / 6 — true division matches torch bit-for-bit; the EUP/VPU cost
    # is fully hidden because the kernel is HBM-bandwidth bound.
    o_ref[...] = (jnp.minimum(jnp.maximum(x + 3.0, 0.0), 6.0) / 6.0).astype(o_ref.dtype)


def h_sigmoid(x: jax.Array, *, alias_input: bool = False) -> jax.Array:
    """Elementwise hard-sigmoid matching torch: ReLU6(x + 3) / 6. Any shape (NCHW expected)."""
    orig_shape = x.shape
    orig_dtype = x.dtype
    total = x.size
    if total == 0:
        return x

    itemsize = jnp.dtype(orig_dtype).itemsize
    sub = _sublane_multiple(orig_dtype)

    lane_w, padded_total = _pick_lane_w(total)

    flat = x.reshape(-1)
    if padded_total != total:
        # Last resort only (total not a multiple of 128): costs extra HBM passes.
        flat = jnp.pad(flat, (0, padded_total - total))
    rows = padded_total // lane_w
    x2d = flat.reshape(rows, lane_w)

    tile_r = _pick_tile_r(rows, lane_w, itemsize, sub)
    grid = (pl.cdiv(rows, tile_r),)

    out2d = pl.pallas_call(
        _h_sigmoid_kernel,
        out_shape=jax.ShapeDtypeStruct((rows, lane_w), orig_dtype),
        grid_spec=pl.GridSpec(
            grid=grid,
            in_specs=[pl.BlockSpec((tile_r, lane_w), lambda i: (i, 0))],
            out_specs=pl.BlockSpec((tile_r, lane_w), lambda i: (i, 0)),
        ),
        compiler_params=pltpu.CompilerParams(
            dimension_semantics=("parallel",),
            vmem_limit_bytes=_VMEM_LIMIT_BYTES,
        ),
        # Same-shape/dtype elementwise op: opt-in HBM buffer reuse. Only enable
        # when x is donated / dead afterwards, otherwise XLA inserts a copy.
        input_output_aliases=({0: 0} if alias_input else {}),
    )(x2d)

    out_flat = out2d.reshape(-1)
    if padded_total != total:
        out_flat = out_flat[:total]
    return out_flat.reshape(orig_shape)


if __name__ == "__main__":
    key = jax.random.PRNGKey(0)
    x = jax.random.normal(key, (2, 4, 16, 16), dtype=jnp.float32) * 4.0

    out = jax.block_until_ready(h_sigmoid(x))
    ref = jnp.clip(x + 3.0, 0.0, 6.0) / 6.0
    assert out.shape == x.shape and out.dtype == x.dtype
    assert jnp.allclose(out, ref, atol=1e-6), "mismatch vs reference"

    # Also exercise the ragged (pad-as-last-resort) path with a tiny odd-sized input.
    x2 = jax.random.normal(jax.random.PRNGKey(1), (3, 5, 7, 7), dtype=jnp.float32) * 4.0
    out2 = jax.block_until_ready(h_sigmoid(x2))
    ref2 = jnp.clip(x2 + 3.0, 0.0, 6.0) / 6.0
    assert jnp.allclose(out2, ref2, atol=1e-6), "mismatch vs reference (ragged path)"

    print("KERNEL_OK")
</pallas_src>

<mosaic_0001>
module attributes {stable_mosaic.version = 11 : i64} {
  func.func @_h_sigmoid_kernel(%arg0: i32, %arg1: memref<1x2048xf32, #tpu.memory_space<vmem>>, %arg2: memref<1x2048xf32, #tpu.memory_space<vmem>>) attributes {dimension_semantics = [#tpu.dimension_semantics<parallel>], iteration_bounds = array<i64: 1>, scalar_prefetch = 0 : i64, scratch_operands = 0 : i64, tpu.core_type = #tpu.core_type<tc>, window_params = [{transform_indices = @transform_0, window_bounds = array<i64: 1, 2048>}, {transform_indices = @transform_1, window_bounds = array<i64: 1, 2048>}]} {
    %c0 = arith.constant 0 : index
    %c0_0 = arith.constant 0 : index
    %0 = vector.load %arg1[%c0, %c0_0] : memref<1x2048xf32, #tpu.memory_space<vmem>>, vector<1x2048xf32>
    %cst = arith.constant 3.000000e+00 : f32
    %1 = vector.broadcast %cst : f32 to vector<1x2048xf32>
    %2 = arith.addf %0, %1 : vector<1x2048xf32>
    %cst_1 = arith.constant 0.000000e+00 : f32
    %3 = vector.broadcast %cst_1 : f32 to vector<1x2048xf32>
    %4 = arith.maximumf %2, %3 : vector<1x2048xf32>
    %cst_2 = arith.constant 6.000000e+00 : f32
    %5 = vector.broadcast %cst_2 : f32 to vector<1x2048xf32>
    %6 = arith.minimumf %4, %5 : vector<1x2048xf32>
    %cst_3 = arith.constant 6.000000e+00 : f32
    %7 = vector.broadcast %cst_3 : f32 to vector<1x2048xf32>
    %8 = arith.divf %6, %7 : vector<1x2048xf32>
    %c0_4 = arith.constant 0 : index
    %c0_5 = arith.constant 0 : index
    %9 = vector.load %arg2[%c0_4, %c0_5] : memref<1x2048xf32, #tpu.memory_space<vmem>>, vector<1x2048xf32>
    tpu.vector_store %arg2[%c0_4, %c0_5], %8 {strides = array<i32>} : memref<1x2048xf32, #tpu.memory_space<vmem>>, vector<1x2048xf32>,
    return
  }
  func.func @transform_0(%arg0: i32) -> (i32, i32) {
    %c0_i32 = arith.constant 0 : i32
    %c0_i32_0 = arith.constant 0 : i32
    return %arg0, %c0_i32 : i32, i32
  }
  func.func @transform_1(%arg0: i32) -> (i32, i32) {
    %c0_i32 = arith.constant 0 : i32
    %c0_i32_0 = arith.constant 0 : i32
    return %arg0, %c0_i32 : i32, i32
  }
}

</mosaic_0001>

<bundles_post_ra>
// kernel: tpu_custom_call.1
= control target key start
LH: loop header
LB: loop body
LE: loop exit
PB: predicated region body
PF: predicated region fallthrough
CT: control target
= control target key end

     0   :  { %6 = vsyncpa [#allocation3], 0  ;;  %s135_s0 = inlined_call_operand.hbm [shape: f32[1,2048], index: 0, kind: input, shape index: {}]   ;;  %s136_s1 = inlined_call_operand.hbm [shape: f32[1,2048], index: 1, kind: output, shape index: {}]  }
   0x1   :  { %7 = vsyncpa [#allocation4], 0  ;;  %s13_s8 = sshll.u32 %s135_s0, 4  ;;  %s116_s9 = smov [#allocation2]   ;;  %s14_s8 = int_to_ptr.hbm [resolvable:$true] %s13_s8 }
   0x2   :  { %s15_s10 = sshll.u32 %s116_s9, 4  ;;  %s16_s10 = int_to_ptr.vmem [resolvable:$true] %s15_s10 }
   0x3   :  { %18 = dma.hbm_to_vmem [thread:$0]  %s14_s8, 256, %s16_s10, [#allocation3]  }
   0x4   :  { %112 = dma.done.wait [#allocation3], 256  }
   0x5   :  { %113 = vsyncadd [#allocation3], 4294967040  ;;  %v117_v0 = vmov 6.0   ;;  %v23_v2 = vld [vmem:[#allocation2] sm:$0xff]  ;;  %v24_v3 = vld [vmem:[#allocation2 + $0x8] sm:$0xff]  ;;  %s118_s0 = smov [#allocation5]  }
   0x6   :  { %62 = vrcp.f32 %v117_v0  ;;  %v25_v4 = vadd.f32 3.0, %v23_v2  ;;  %v26_v6 = vadd.f32 3.0, %v24_v3  ;;  %s47_s11 = sshll.u32 %s118_s0, 4  ;;  %s49_s14 = sshll.u32 %s136_s1, 4  ;;  %s48_s11 = int_to_ptr.vmem [resolvable:$true] %s47_s11  ;;  %s50_s14 = int_to_ptr.hbm [resolvable:$true] %s49_s14 }
   0x8   :  { %v27_v7 = vmax.f32 %v25_v4, 0.0  ;;  %v28_v9 = vmax.f32 %v26_v6, 0.0 }
   0xa   :  { %v29_v11 = vmin.f32 %v27_v7, 6.0  ;;  %v30_v12 = vmin.f32 %v28_v9, 6.0 }
   0xc   :  { %v63_v1 = vpop.eup %62 }
   0xd   :  { %v32_v5 = vmul.f32 6.0, %v63_v1  ;;  %vm36_vm0 = vweird.f32 %v63_v1 }
   0xf   :  { %v33_v8 = vsub.f32 1.0, %v32_v5 }
  0x11   :  { %v34_v10 = vmul.f32 %v63_v1, %v33_v8 }
  0x13   :  { %v35_v13 = vadd.f32 %v63_v1, %v34_v10 }
  0x15   :  { %v37_v14 = vsel %vm36_vm0, %v63_v1, %v35_v13 }
  0x16   :  { %v38_v15 = vmul.f32 %v37_v14, %v29_v11  ;;  %v39_v16 = vmul.f32 %v37_v14, %v30_v12 }
  0x18   :  { %40 = vst [vmem:[#allocation5] sm:$0xff] %v38_v15 }
  0x19   :  { %41 = vst [vmem:[#allocation5 + $0x8] sm:$0xff] %v39_v16 }
  0x1a   :  { %52 = dma.vmem_to_hbm [thread:$0]  %s48_s11, 256, %s50_s14, [#allocation4]  }
  0x1b   :  { %114 = dma.done.wait [#allocation4], 256  }
  0x1c   :  { %115 = vsyncadd [#allocation4], 4294967040 }
  0x1d   :  { %57 = vsyncpa [#allocation3], 1 }
  0x1e   :  { %58 = vsyncpa [#allocation4], 1 }

</bundles_post_ra>
